<compile_context>
chip_gen: v7x
topology: tpu7x:2x2x1
jax: 0.10.0
libtpu: 0.0.40
codegen_flags: <defaults>
</compile_context>

<pallas_src>
import jax
import jax.numpy as jnp
from jax.experimental import pallas as pl
from jax.experimental.pallas import tpu as pltpu

IN_FEATURES = 28 * 28   # 784 (full contraction dim; legal block extent as-is)
HPAD = 128              # hidden padded to one full lane group
OUT_PAD = 128           # lane-dense output width


def _round_up(n, m):
    return ((n + m - 1) // m) * m


def mlp1_kernel(x_ref, w1_ref, b1_ref, w2_ref, b2_ref, w3_ref, b3_ref, o_ref):
    # x tile: (TB, 784) f32 straight from HBM; cast to bf16 for the MXU here
    # so the wrapper never materializes a padded/cast copy of x.
    x = x_ref[...].astype(jnp.bfloat16)

    # fc1 + ReLU (MXU bf16 in / f32 accumulate; bias + ReLU on the VPU in f32)
    h1 = jnp.dot(x, w1_ref[...], preferred_element_type=jnp.float32) + b1_ref[...]
    h1 = jnp.maximum(h1, 0.0)
    # dropout1 (p=0.2): identity at inference

    # fc2 + ReLU
    h2 = jnp.dot(h1.astype(jnp.bfloat16), w2_ref[...],
                 preferred_element_type=jnp.float32) + b2_ref[...]
    h2 = jnp.maximum(h2, 0.0)
    # dropout2 (p=0.5): identity at inference

    # fc3 (no activation); columns >= num_classes are zero-weight padding.
    out = jnp.dot(h2.astype(jnp.bfloat16), w3_ref[...],
                  preferred_element_type=jnp.float32) + b3_ref[...]
    o_ref[...] = out.astype(o_ref.dtype)   # bf16 writeback (half the out bytes)


def mlp1_forward(x, params, *, block_b=2048):
    """x: (B, ...) viewed as (B, 784). Returns (B, num_classes) float32."""
    w1, b1, w2, b2, w3, b3 = params
    B = x.shape[0]
    hidden = w1.shape[1]
    num_classes = w3.shape[1]
    assert hidden <= HPAD and num_classes <= OUT_PAD

    # Flatten only: metadata-level reshape, x stays f32 in HBM (no extra pass).
    x2d = x.reshape(B, IN_FEATURES)

    # Batch tiling: >= 2 tiles when possible (feeds both v7x TensorCores) and
    # tb = round_up(cdiv(B, n_tiles), 8) so padding is bounded by < 8 rows/tile.
    n_tiles = max(pl.cdiv(B, block_b), 2)
    tb = _round_up(pl.cdiv(B, n_tiles), 8)
    n_tiles = pl.cdiv(B, tb)

    # Weights: bf16 for the MXU; hidden padded 32 -> HPAD and classes -> OUT_PAD
    # with zeros (tiny arrays, exact math). Biases stay f32 for the VPU add.
    w1p = jnp.pad(w1.astype(jnp.bfloat16), ((0, 0), (0, HPAD - hidden)))
    b1p = jnp.pad(b1.astype(jnp.float32), ((0, 0), (0, HPAD - hidden)))
    w2p = jnp.pad(w2.astype(jnp.bfloat16),
                  ((0, HPAD - hidden), (0, HPAD - hidden)))
    b2p = jnp.pad(b2.astype(jnp.float32), ((0, 0), (0, HPAD - hidden)))
    w3p = jnp.pad(w3.astype(jnp.bfloat16),
                  ((0, HPAD - hidden), (0, OUT_PAD - num_classes)))
    b3p = jnp.pad(b3.astype(jnp.float32), ((0, 0), (0, OUT_PAD - num_classes)))

    weight_bytes = sum(int(a.size) * a.dtype.itemsize
                       for a in (w1p, b1p, w2p, b2p, w3p, b3p))

    # VMEM budget: double-buffered x/out tiles + single-buffered weights +
    # in-kernel intermediates; cap at v7x's 64 MiB physical ceiling (fine on
    # v5e/v6e's 128 MiB parts).
    est = (2 * tb * IN_FEATURES * 4            # x tiles, f32, double-buffered
           + 2 * tb * OUT_PAD * 2              # out tiles, bf16, double-buffered
           + weight_bytes                      # resident weights, Buffered(1)
           + tb * (IN_FEATURES * 2 + 3 * HPAD * 4))  # bf16 x, h1/h2/out f32
    vmem_limit = int(min(max(32 << 20, 2 * est), 64 << 20))

    # Advisory cost estimate (3 GEMMs; HBM bytes for x read, bf16 out, weights).
    total_rows = n_tiles * tb
    flops = 2 * total_rows * (IN_FEATURES * HPAD + HPAD * HPAD + HPAD * OUT_PAD)
    bytes_accessed = (total_rows * IN_FEATURES * 4
                      + total_rows * OUT_PAD * 2
                      + weight_bytes)
    cost = pl.CostEstimate(flops=flops, transcendentals=0,
                           bytes_accessed=bytes_accessed)

    out = pl.pallas_call(
        mlp1_kernel,
        out_shape=jax.ShapeDtypeStruct((B, OUT_PAD), jnp.bfloat16),
        grid=(n_tiles,),
        in_specs=[
            # Streamed x tile (default double buffering).
            pl.BlockSpec((tb, IN_FEATURES), lambda i: (i, 0)),
            # VMEM-resident weights/biases: constant index maps, single buffer.
            pl.BlockSpec((IN_FEATURES, HPAD), lambda i: (0, 0),
                         pipeline_mode=pl.Buffered(1)),
            pl.BlockSpec((1, HPAD), lambda i: (0, 0),
                         pipeline_mode=pl.Buffered(1)),
            pl.BlockSpec((HPAD, HPAD), lambda i: (0, 0),
                         pipeline_mode=pl.Buffered(1)),
            pl.BlockSpec((1, HPAD), lambda i: (0, 0),
                         pipeline_mode=pl.Buffered(1)),
            pl.BlockSpec((HPAD, OUT_PAD), lambda i: (0, 0),
                         pipeline_mode=pl.Buffered(1)),
            pl.BlockSpec((1, OUT_PAD), lambda i: (0, 0),
                         pipeline_mode=pl.Buffered(1)),
        ],
        out_specs=pl.BlockSpec((tb, OUT_PAD), lambda i: (i, 0)),
        compiler_params=pltpu.CompilerParams(
            dimension_semantics=("parallel",),
            vmem_limit_bytes=vmem_limit,
        ),
        cost_estimate=cost,
    )(x2d, w1p, b1p, w2p, b2p, w3p, b3p)

    # Slice off class padding; upcast for callers that expect f32 logits.
    # (Callers that can consume bf16 should drop the astype and fuse the slice.)
    return out[:, :num_classes].astype(jnp.float32)


def init_params(key, hidden_size=32, num_classes=10, in_features=IN_FEATURES):
    k1, k2, k3, k4, k5, k6 = jax.random.split(key, 6)

    def lin(kw, kb, fan_in, fan_out):
        bound = 1.0 / jnp.sqrt(fan_in)
        w = jax.random.uniform(kw, (fan_in, fan_out), jnp.float32, -bound, bound)
        b = jax.random.uniform(kb, (1, fan_out), jnp.float32, -bound, bound)
        return w, b

    w1, b1 = lin(k1, k2, in_features, hidden_size)
    w2, b2 = lin(k3, k4, hidden_size, hidden_size)
    w3, b3 = lin(k5, k6, hidden_size, num_classes)
    return (w1, b1, w2, b2, w3, b3)


def reference_forward_bf16(x, params):
    """Mirrors the kernel's bf16-input / f32-accumulate / bf16-writeback path."""
    w1, b1, w2, b2, w3, b3 = params
    x2d = x.reshape(x.shape[0], -1).astype(jnp.bfloat16)
    h1 = jnp.maximum(
        jnp.dot(x2d, w1.astype(jnp.bfloat16),
                preferred_element_type=jnp.float32) + b1, 0.0)
    h2 = jnp.maximum(
        jnp.dot(h1.astype(jnp.bfloat16), w2.astype(jnp.bfloat16),
                preferred_element_type=jnp.float32) + b2, 0.0)
    out = jnp.dot(h2.astype(jnp.bfloat16), w3.astype(jnp.bfloat16),
                  preferred_element_type=jnp.float32) + b3
    return out.astype(jnp.bfloat16).astype(jnp.float32)


def reference_forward_f32(x, params):
    w1, b1, w2, b2, w3, b3 = params
    x2d = x.reshape(x.shape[0], -1)
    h1 = jnp.maximum(x2d @ w1 + b1, 0.0)
    h2 = jnp.maximum(h1 @ w2 + b2, 0.0)
    return h2 @ w3 + b3


if __name__ == "__main__":
    key = jax.random.PRNGKey(0)
    kx, kp = jax.random.split(key)

    B, hidden_size, num_classes = 2, 32, 10
    # MNIST-style input, NCHW: (B, 1, 28, 28) — flattened (view-only) in wrapper.
    x = jax.random.normal(kx, (B, 1, 28, 28), dtype=jnp.float32)
    params = init_params(kp, hidden_size=hidden_size, num_classes=num_classes)

    out = mlp1_forward(x, params)
    out = jax.block_until_ready(out)
    assert out.shape == (B, num_classes)

    # Tight check vs a reference using the same bf16/f32-accumulate math
    # (including the bf16 output writeback).
    ref_bf16 = reference_forward_bf16(x, params)
    assert jnp.allclose(out, ref_bf16, atol=5e-3, rtol=5e-3)

    # Loose sanity check vs the pure-f32 PyTorch-equivalent math.
    ref_f32 = reference_forward_f32(x, params)
    assert jnp.allclose(out, ref_f32, atol=5e-2, rtol=5e-2)

    print("KERNEL_OK")
</pallas_src>

<mosaic_0001>
module attributes {stable_mosaic.version = 11 : i64} {
  func.func @mlp1_kernel(%arg0: i32, %arg1: memref<8x784xf32, #tpu.memory_space<vmem>>, %arg2: memref<784x128xbf16, #tpu.memory_space<vmem>>, %arg3: memref<1x128xf32, #tpu.memory_space<vmem>>, %arg4: memref<128x128xbf16, #tpu.memory_space<vmem>>, %arg5: memref<1x128xf32, #tpu.memory_space<vmem>>, %arg6: memref<128x128xbf16, #tpu.memory_space<vmem>>, %arg7: memref<1x128xf32, #tpu.memory_space<vmem>>, %arg8: memref<8x128xbf16, #tpu.memory_space<vmem>>) attributes {dimension_semantics = [#tpu.dimension_semantics<parallel>], iteration_bounds = array<i64: 1>, scalar_prefetch = 0 : i64, scratch_operands = 0 : i64, tpu.core_type = #tpu.core_type<tc>, window_params = [{transform_indices = @transform_0, window_bounds = array<i64: 8, 784>}, {pipeline_mode = #tpu.pipeline_mode<synchronous>, transform_indices = @transform_1, window_bounds = array<i64: 784, 128>}, {pipeline_mode = #tpu.pipeline_mode<synchronous>, transform_indices = @transform_2, window_bounds = array<i64: 1, 128>}, {pipeline_mode = #tpu.pipeline_mode<synchronous>, transform_indices = @transform_3, window_bounds = array<i64: 128, 128>}, {pipeline_mode = #tpu.pipeline_mode<synchronous>, transform_indices = @transform_4, window_bounds = array<i64: 1, 128>}, {pipeline_mode = #tpu.pipeline_mode<synchronous>, transform_indices = @transform_5, window_bounds = array<i64: 128, 128>}, {pipeline_mode = #tpu.pipeline_mode<synchronous>, transform_indices = @transform_6, window_bounds = array<i64: 1, 128>}, {transform_indices = @transform_7, window_bounds = array<i64: 8, 128>}]} {
    %c0 = arith.constant 0 : index
    %c0_0 = arith.constant 0 : index
    %0 = vector.load %arg1[%c0, %c0_0] : memref<8x784xf32, #tpu.memory_space<vmem>>, vector<8x784xf32>
    %1 = arith.truncf %0 : vector<8x784xf32> to vector<8x784xbf16>
    %c0_1 = arith.constant 0 : index
    %c0_2 = arith.constant 0 : index
    %2 = vector.load %arg2[%c0_1, %c0_2] : memref<784x128xbf16, #tpu.memory_space<vmem>>, vector<784x128xbf16>
    %cst = arith.constant dense<0.000000e+00> : vector<8x128xf32>
    %3 = tpu.matmul %1, %2, %cst {dimension_numbers = #tpu.dot_dimension_numbers<[1], [0], [0], [1], [0, 0, 1, 1], [], []>} : vector<8x784xbf16>, vector<784x128xbf16>, vector<8x128xf32> -> vector<8x128xf32>
    %c0_3 = arith.constant 0 : index
    %c0_4 = arith.constant 0 : index
    %4 = vector.load %arg3[%c0_3, %c0_4] : memref<1x128xf32, #tpu.memory_space<vmem>>, vector<1x128xf32>
    %5 = vector.broadcast %4 : vector<1x128xf32> to vector<8x128xf32>
    %6 = arith.addf %3, %5 : vector<8x128xf32>
    %cst_5 = arith.constant 0.000000e+00 : f32
    %7 = vector.broadcast %cst_5 : f32 to vector<8x128xf32>
    %8 = arith.maximumf %6, %7 : vector<8x128xf32>
    %9 = arith.truncf %8 : vector<8x128xf32> to vector<8x128xbf16>
    %c0_6 = arith.constant 0 : index
    %c0_7 = arith.constant 0 : index
    %10 = vector.load %arg4[%c0_6, %c0_7] : memref<128x128xbf16, #tpu.memory_space<vmem>>, vector<128x128xbf16>
    %cst_8 = arith.constant dense<0.000000e+00> : vector<8x128xf32>
    %11 = tpu.matmul %9, %10, %cst_8 {dimension_numbers = #tpu.dot_dimension_numbers<[1], [0], [0], [1], [0, 0, 1, 1], [], []>} : vector<8x128xbf16>, vector<128x128xbf16>, vector<8x128xf32> -> vector<8x128xf32>
    %c0_9 = arith.constant 0 : index
    %c0_10 = arith.constant 0 : index
    %12 = vector.load %arg5[%c0_9, %c0_10] : memref<1x128xf32, #tpu.memory_space<vmem>>, vector<1x128xf32>
    %13 = vector.broadcast %12 : vector<1x128xf32> to vector<8x128xf32>
    %14 = arith.addf %11, %13 : vector<8x128xf32>
    %cst_11 = arith.constant 0.000000e+00 : f32
    %15 = vector.broadcast %cst_11 : f32 to vector<8x128xf32>
    %16 = arith.maximumf %14, %15 : vector<8x128xf32>
    %17 = arith.truncf %16 : vector<8x128xf32> to vector<8x128xbf16>
    %c0_12 = arith.constant 0 : index
    %c0_13 = arith.constant 0 : index
    %18 = vector.load %arg6[%c0_12, %c0_13] : memref<128x128xbf16, #tpu.memory_space<vmem>>, vector<128x128xbf16>
    %cst_14 = arith.constant dense<0.000000e+00> : vector<8x128xf32>
    %19 = tpu.matmul %17, %18, %cst_14 {dimension_numbers = #tpu.dot_dimension_numbers<[1], [0], [0], [1], [0, 0, 1, 1], [], []>} : vector<8x128xbf16>, vector<128x128xbf16>, vector<8x128xf32> -> vector<8x128xf32>
    %c0_15 = arith.constant 0 : index
    %c0_16 = arith.constant 0 : index
    %20 = vector.load %arg7[%c0_15, %c0_16] : memref<1x128xf32, #tpu.memory_space<vmem>>, vector<1x128xf32>
    %21 = vector.broadcast %20 : vector<1x128xf32> to vector<8x128xf32>
    %22 = arith.addf %19, %21 : vector<8x128xf32>
    %23 = arith.truncf %22 : vector<8x128xf32> to vector<8x128xbf16>
    %c0_17 = arith.constant 0 : index
    %c0_18 = arith.constant 0 : index
    %24 = vector.load %arg8[%c0_17, %c0_18] : memref<8x128xbf16, #tpu.memory_space<vmem>>, vector<8x128xbf16>
    tpu.vector_store %arg8[%c0_17, %c0_18], %23 {strides = array<i32>} : memref<8x128xbf16, #tpu.memory_space<vmem>>, vector<8x128xbf16>,
    return
  }
  func.func @transform_0(%arg0: i32) -> (i32, i32) {
    %c0_i32 = arith.constant 0 : i32
    %c0_i32_0 = arith.constant 0 : i32
    return %arg0, %c0_i32 : i32, i32
  }
  func.func @transform_1(%arg0: i32) -> (i32, i32) {
    %c0_i32 = arith.constant 0 : i32
    %c0_i32_0 = arith.constant 0 : i32
    %c0_i32_1 = arith.constant 0 : i32
    return %c0_i32, %c0_i32_0 : i32, i32
  }
  func.func @transform_2(%arg0: i32) -> (i32, i32) {
    %c0_i32 = arith.constant 0 : i32
    %c0_i32_0 = arith.constant 0 : i32
    %c0_i32_1 = arith.constant 0 : i32
    return %c0_i32, %c0_i32_0 : i32, i32
  }
  func.func @transform_3(%arg0: i32) -> (i32, i32) {
    %c0_i32 = arith.constant 0 : i32
    %c0_i32_0 = arith.constant 0 : i32
    %c0_i32_1 = arith.constant 0 : i32
    return %c0_i32, %c0_i32_0 : i32, i32
  }
  func.func @transform_4(%arg0: i32) -> (i32, i32) {
    %c0_i32 = arith.constant 0 : i32
    %c0_i32_0 = arith.constant 0 : i32
    %c0_i32_1 = arith.constant 0 : i32
    return %c0_i32, %c0_i32_0 : i32, i32
  }
  func.func @transform_5(%arg0: i32) -> (i32, i32) {
    %c0_i32 = arith.constant 0 : i32
    %c0_i32_0 = arith.constant 0 : i32
    %c0_i32_1 = arith.constant 0 : i32
    return %c0_i32, %c0_i32_0 : i32, i32
  }
  func.func @transform_6(%arg0: i32) -> (i32, i32) {
    %c0_i32 = arith.constant 0 : i32
    %c0_i32_0 = arith.constant 0 : i32
    %c0_i32_1 = arith.constant 0 : i32
    return %c0_i32, %c0_i32_0 : i32, i32
  }
  func.func @transform_7(%arg0: i32) -> (i32, i32) {
    %c0_i32 = arith.constant 0 : i32
    %c0_i32_0 = arith.constant 0 : i32
    return %arg0, %c0_i32 : i32, i32
  }
}

</mosaic_0001>

<bundles_post_ra>
// kernel: tpu_custom_call.1
= control target key start
LH: loop header
LB: loop body
LE: loop exit
PB: predicated region body
PF: predicated region fallthrough
CT: control target
= control target key end

     0   :  { %12 = vsyncpa [#allocation3], 0  ;;  %s1617_s0 = inlined_call_operand.hbm [shape: f32[2,784], index: 0, kind: input, shape index: {}]   ;;  %s1618_s1 = inlined_call_operand.hbm [shape: bf16[784,128], index: 1, kind: input, shape index: {}]   ;;  %s1619_s2 = inlined_call_operand.vmem [shape: f32[1,128], index: 2, kind: input, shape index: {}]   ;;  %s1620_s3 = inlined_call_operand.hbm [shape: bf16[128,128], index: 3, kind: input, shape index: {}]   ;;  %s1621_s4 = inlined_call_operand.vmem [shape: f32[1,128], index: 4, kind: input, shape index: {}]   ;;  %s1622_s5 = inlined_call_operand.hbm [shape: bf16[128,128], index: 5, kind: input, shape index: {}]   ;;  %s1623_s6 = inlined_call_operand.vmem [shape: f32[1,128], index: 6, kind: input, shape index: {}]   ;;  %s1624_s7 = inlined_call_operand.hbm [shape: bf16[2,128], index: 7, kind: output, shape index: {}]  }
   0x1   :  { %13 = vsyncpa [#allocation6], 0 }
   0x2   :  { %14 = vsyncpa [#allocation9], 0 }
   0x3   :  { %15 = vsyncpa [#allocation4], 0 }
   0x4   :  { %20 = vsyncadd [#allocation3], 672  ;;  %s1439_s24 = smov [#allocation5]   ;;  %s1321_s28 = scalar_lea.hbm %s1618_s1, 6272 }
   0x5   :  { %s33_s25 = sshll.u32 %s1439_s24, 4  ;;  %p1322_p0 = scmp.ne.s32.totalorder %s1618_s1, %s1321_s28  ;;  %s34_s25 = int_to_ptr.vmem [resolvable:$true] %s33_s25 }
   0x6   :  { %p1325_p1 = scmp.lt.u32.totalorder %s1321_s28, %s1618_s1 }
   0x8   :  { %p1327_p2 = pnand %p1325_p1, %p1322_p0 }
   0xa   :  { %1330 = shalt.err (!%p1327_p2)
}
   0xb   :  { %s1331_s10 = scalar_lea.vmem %s34_s25, 6272  ;;  %p1336_p4 = scmp.lt.s32.totalorder %s34_s25, %s34_s25 }
   0xc   :  { %p1332_p3 = scmp.ne.s32.totalorder %s34_s25, %s1331_s10  ;;  %p1337_p5 = scmp.lt.s32.totalorder %s1331_s10, %s1331_s10 }
   0xe   :  { %p1338_p6 = por %p1337_p5, %p1336_p4 }
  0x10   :  { %p1339_p7 = pnand %p1338_p6, %p1332_p3 }
  0x12   :  { %1342 = shalt.err (!%p1339_p7)
}
  0x13   :  { %s1440_s11 = smov 64   ;;  %s1441_s12 = smov 4  }
  0x14   :  { %39 = dma.hbm_to_vmem [thread:$0]  %s1618_s1, 6272, %s34_s25, [#allocation6], %s1440_s11, %s1440_s11, %s1441_s12  }
  0x15   :  { %s1442_s15 = smov [#allocation2]   ;;  %s1343_s19 = scalar_lea.hbm %s1617_s0, 224 }
  0x16   :  { %s21_s16 = sshll.u32 %s1442_s15, 4  ;;  %p1344_p8 = scmp.ne.s32.totalorder %s1617_s0, %s1343_s19  ;;  %s22_s16 = int_to_ptr.vmem [resolvable:$true] %s21_s16 }
  0x17   :  { %p1347_p9 = scmp.lt.u32.totalorder %s1343_s19, %s1617_s0 }
  0x19   :  { %p1349_p10 = pnand %p1347_p9, %p1344_p8 }
  0x1b   :  { %1352 = shalt.err (!%p1349_p10)
}
  0x1c   :  { %s1353_s24 = scalar_lea.vmem %s22_s16, 224  ;;  %s1357_s1 = scalar_lea.vmem %s22_s16, 896 }
  0x1d   :  { %p1354_p11 = scmp.ne.s32.totalorder %s22_s16, %s1353_s24  ;;  %p1358_p12 = scmp.lt.s32.totalorder %s22_s16, %s22_s16 }
  0x1e   :  { %p1359_p13 = scmp.lt.s32.totalorder %s1357_s1, %s1353_s24 }
  0x20   :  { %p1360_p0 = por %p1359_p13, %p1358_p12 }
  0x22   :  { %p1361_p1 = pnand %p1360_p0, %p1354_p11 }
  0x24   :  { %1364 = shalt.err (!%p1361_p1)
}
  0x25   :  { %s1443_s25 = smov 224   ;;  %s1444_s26 = smov 14  }
  0x26   :  { %27 = dma.hbm_to_vmem [thread:$0]  %s1617_s0, 224, %s22_s16, [#allocation3], %s1443_s25, %s1443_s25, %s1444_s26  }
  0x27   :  { %s1445_s29 = smov [#allocation7]   ;;  %s1446_s8 = smov [#allocation8]  }
  0x28   :  { %s47_s30 = sshll.u32 %s1445_s29, 4  ;;  %s61_s9 = sshll.u32 %s1446_s8, 4  ;;  %s48_s30 = int_to_ptr.vmem [resolvable:$true] %s47_s30  ;;  %s1521_s9 = int_to_ptr.vmem [resolvable:$true] %s61_s9 }
  0x29   :  { %s1365_s14 = scalar_lea.hbm %s1620_s3, 1024 }
  0x2a   :  { %p1366_p2 = scmp.ne.s32.totalorder %s1620_s3, %s1365_s14  ;;  %p1369_p3 = scmp.lt.u32.totalorder %s1365_s14, %s1620_s3 }
  0x2c   :  { %p1371_p4 = pnand %p1369_p3, %p1366_p2 }
  0x2e   :  { %1374 = shalt.err (!%p1371_p4)
}
  0x2f   :  { %s1375_s0 = scalar_lea.vmem %s48_s30, 1024  ;;  %p1380_p6 = scmp.lt.s32.totalorder %s48_s30, %s48_s30 }
  0x30   :  { %p1376_p5 = scmp.ne.s32.totalorder %s48_s30, %s1375_s0  ;;  %p1381_p7 = scmp.lt.s32.totalorder %s1375_s0, %s1375_s0 }
  0x32   :  { %p1382_p8 = por %p1381_p7, %p1380_p6 }
  0x34   :  { %p1383_p9 = pnand %p1382_p8, %p1376_p5 }
  0x36   :  { %1386 = shalt.err (!%p1383_p9)
}
  0x37   :  { %53 = dma.hbm_to_vmem [thread:$0]  %s1620_s3, 1024, %s48_s30, [#allocation6], %s1440_s11, %s1440_s11, %s1441_s12  }
  0x38   :  { %s1387_s23 = scalar_lea.hbm %s1622_s5, 1024 }
  0x39   :  { %p1388_p10 = scmp.ne.s32.totalorder %s1622_s5, %s1387_s23  ;;  %p1391_p11 = scmp.lt.u32.totalorder %s1387_s23, %s1622_s5 }
  0x3b   :  { %p1393_p12 = pnand %p1391_p11, %p1388_p10 }
  0x3d   :  { %1396 = shalt.err (!%p1393_p12)
}
  0x3e   :  { %s1397_s27 = scalar_lea.vmem %s1521_s9, 1024  ;;  %p1402_p0 = scmp.lt.s32.totalorder %s1521_s9, %s1521_s9 }
  0x3f   :  { %p1398_p13 = scmp.ne.s32.totalorder %s1521_s9, %s1397_s27  ;;  %p1403_p1 = scmp.lt.s32.totalorder %s1397_s27, %s1397_s27 }
  0x41   :  { %p1404_p2 = por %p1403_p1, %p1402_p0 }
  0x43   :  { %p1405_p3 = pnand %p1404_p2, %p1398_p13 }
  0x45   :  { %1408 = shalt.err (!%p1405_p3)
}
  0x46   :  { %67 = dma.hbm_to_vmem [thread:$0]  %s1622_s5, 1024, %s1521_s9, [#allocation9], %s1440_s11, %s1440_s11, %s1441_s12  }
  0x47   :  { %1431 = dma.done.wait [#allocation3], 896  }
  0x48   :  { %1432 = vsyncadd [#allocation3], 4294966400 }
  0x49   :  { %1433 = dma.done.wait [#allocation6], 7296  }
  0x4a   :  { %1434 = vsyncadd [#allocation6], 4294960000 }
  0x4b   :  { %1435 = dma.done.wait [#allocation9], 1024  }
  0x4c   :  { %1436 = vsyncadd [#allocation9], 4294966272  ;;  %v1244_v0 = vld [vmem:[#allocation5 + $0x40] sm:$0xff]   ;;  %v1248_v4 = vld [vmem:[#allocation5 + $0x48] sm:$0xff]   ;;  %v1447_v23 = vmov 1983009808   ;;  %v106_v25 = vlaneseq }
  0x4d   :  { %v1245_v1 = vld [vmem:[#allocation5] sm:$0xff]   ;;  %1097 = vmatprep.subr.bf16.mxu0 %v1244_v0  ;;  %v1249_v5 = vld [vmem:[#allocation5 + $0x8] sm:$0xff]   ;;  %v1252_v8 = vld [vmem:[#allocation5 + $0x50] sm:$0xff]   ;;  %v104_v24 = vunpack.c.l.s4 %v1447_v23  ;;  %v1448_v47 = vmov 0.0   ;;  %vm1449_vm0 = vmmov 0   ;;  %vm583_vm1 = vcmask 130048  }
  0x4e   :  { %v1246_v2 = vld [vmem:[#allocation5 + $0xc0] sm:$0xff]   ;;  %1098 = vmatpush3.bf16.msra.mxu0 %v1245_v1  ;;  %v1250_v6 = vld [vmem:[#allocation5 + $0xc8] sm:$0xff]   ;;  %v1253_v9 = vld [vmem:[#allocation5 + $0x10] sm:$0xff]   ;;  %v1558_v31 = vshrl.u32 %v106_v25, 7 }
  0x4f   :  { %v1247_v3 = vld [vmem:[#allocation5 + $0x80] sm:$0xff]   ;;  %1119 = vmatprep.subr.bf16.mxu1 %v1246_v2  ;;  %1099 = vmatprep.subr.bf16.mxu0 %v1248_v4  ;;  %v1251_v7 = vld [vmem:[#allocation5 + $0x88] sm:$0xff]   ;;  %v1254_v10 = vld [vmem:[#allocation5 + $0xd0] sm:$0xff]   ;;  %v105_v30 = vunpack.c.0.s8 %v104_v24 }
  0x50   :  { %1120 = vmatpush3.bf16.msra.mxu1 %v1247_v3  ;;  %v1255_v11 = vld [vmem:[#allocation5 + $0x90] sm:$0xff]   ;;  %v1256_v12 = vld [vmem:[#allocation5 + $0x58] sm:$0xff]   ;;  %v1260_v16 = vld [vmem:[#allocation5 + $0x60] sm:$0xff]  }
  0x51   :  { %1121 = vmatprep.subr.bf16.mxu1 %v1250_v6  ;;  %v1257_v13 = vld [vmem:[#allocation5 + $0x18] sm:$0xff]   ;;  %v1261_v17 = vld [vmem:[#allocation5 + $0x20] sm:$0xff]   ;;  %v1264_v20 = vld [vmem:[#allocation5 + $0x68] sm:$0xff]   ;;  %v1561_v36 = vsub.s32 %v105_v30, %v1558_v31 }
  0x52   :  { %1100 = vmatpush3.bf16.msra.mxu0 %v1249_v5  ;;  %v1258_v14 = vld [vmem:[#allocation5 + $0xd8] sm:$0xff]   ;;  %v1262_v18 = vld [vmem:[#allocation5 + $0xe0] sm:$0xff]   ;;  %v1265_v21 = vld [vmem:[#allocation5 + $0x28] sm:$0xff]  }
  0x53   :  { %1101 = vmatprep.subr.bf16.mxu0 %v1252_v8  ;;  %v1259_v15 = vld [vmem:[#allocation5 + $0x98] sm:$0xff]   ;;  %v1263_v19 = vld [vmem:[#allocation5 + $0xa0] sm:$0xff]   ;;  %v1266_v22 = vld [vmem:[#allocation5 + $0xe8] sm:$0xff]  }
  0x54   :  { %1122 = vmatpush3.bf16.msra.mxu1 %v1251_v7  ;;  %v1267_v26 = vld [vmem:[#allocation5 + $0xa8] sm:$0xff]   ;;  %v1268_v27 = vld [vmem:[#allocation5 + $0x70] sm:$0xff]   ;;  %v1272_v33 = vld [vmem:[#allocation5 + $0x78] sm:$0xff]  }
  0x55   :  { %1123 = vmatprep.subr.bf16.mxu1 %v1254_v10  ;;  %v1269_v28 = vld [vmem:[#allocation5 + $0x30] sm:$0xff]   ;;  %v1273_v34 = vld [vmem:[#allocation5 + $0x38] sm:$0xff]   ;;  %v1280_v42 = vld [vmem:[#allocation5 + $0x140] sm:$0xff]  }
  0x56   :  { %1102 = vmatpush3.bf16.msra.mxu0 %v1253_v9  ;;  %v1270_v29 = vld [vmem:[#allocation5 + $0xf0] sm:$0xff]   ;;  %v1274_v35 = vld [vmem:[#allocation5 + $0xf8] sm:$0xff]   ;;  %v1283_v52 = vld [vmem:[#allocation5 + $0x100] sm:$0xff]  }
  0x57   :  { %1103 = vmatprep.subr.bf16.mxu0 %v1256_v12  ;;  %v1271_v32 = vld [vmem:[#allocation5 + $0xb0] sm:$0xff]   ;;  %v1279_v39 = vld [vmem:[#allocation5 + $0xb8] sm:$0xff]   ;;  %v1284_v55 = vld [vmem:[#allocation5 + $0x148] sm:$0xff]  }
  0x58   :  { %1124 = vmatpush3.bf16.msra.mxu1 %v1255_v11  ;;  %v1275_v37 = vld [vmem:[#allocation2] ss:$14 sps:$4 sm:$0xff]   ;;  %v1277_v38 = vld [vmem:[#allocation2 + $0x1c] ss:$14 sps:$4 sm:$0xff]   ;;  %v1281_v43 = vld [vmem:[#allocation2 + $0x4] ss:$14 sps:$4 sm:$0xff]  }
  0x59   :  { %1125 = vmatprep.subr.bf16.mxu1 %v1258_v14  ;;  %v109_v40 = vrot.slane %v1275_v37, %v1561_v36  ;;  %v123_v41 = vrot.slane %v1277_v38, %v1561_v36  ;;  %v1282_v44 = vld [vmem:[#allocation2 + $0x20] ss:$14 sps:$4 sm:$0xff]   ;;  %v116_v48 = vrot.slane %v1281_v43, %v1561_v36  ;;  %v1290_v63 = vld [vmem:[#allocation5 + $0x160] sm:$0xff]   ;;  %v1302_v5 = vld [vmem:[#allocation2 + $0x24] ss:$14 sps:$4 sm:$0xff]  }
  0x5a   :  { %1104 = vmatpush3.bf16.msra.mxu0 %v1257_v13  ;;  %v130_v49 = vrot.slane %v1282_v44, %v1561_v36  ;;  %v1285_v58 = vld [vmem:[#allocation5 + $0x108] sm:$0xff]   ;;  %v1286_v59 = vld [vmem:[#allocation5 + $0x150] sm:$0xff]   ;;  %v1288_v61 = vld [vmem:[#allocation5 + $0x158] sm:$0xff]   ;;  %v159_v10 = vrot.slane %v1302_v5, %v1561_v36 }
  0x5b   :  { %1105 = vmatprep.subr.bf16.mxu0 %v1260_v16  ;;  %v132_v45 = vcombine.high %v109_v40, %v123_v41  ;;  %v131_v46 = vcombine.low %v109_v40, %v123_v41  ;;  %v1287_v60 = vld [vmem:[#allocation5 + $0x110] sm:$0xff]   ;;  %v1289_v62 = vld [vmem:[#allocation5 + $0x118] sm:$0xff]   ;;  %v1298_v0 = vld [vmem:[#allocation5 + $0x180] sm:$0xff]  }
  0x5c   :  { %1126 = vmatpush3.bf16.msra.mxu1 %v1259_v15  ;;  %v134_v53 = vcombine.high %v116_v48, %v130_v49  ;;  %v133_v54 = vcombine.low %v116_v48, %v130_v49  ;;  %v1291_v1 = vld [vmem:[#allocation5 + $0x120] sm:$0xff]   ;;  %v1292_v4 = vld [vmem:[#allocation5 + $0x168] sm:$0xff]   ;;  %v1304_v6 = vld [vmem:[#allocation2 + $0x28] ss:$14 sps:$4 sm:$0x33]  }
  0x5d   :  { %1127 = vmatprep.subr.bf16.mxu1 %v1262_v18  ;;  %v178_v50 = vpack.c.bf16 %v132_v45, %v132_v45  ;;  %v177_v51 = vpack.c.bf16 %v131_v46, %v131_v46  ;;  %v1299_v2 = vld [vmem:[#allocation2 + $0x8] ss:$14 sps:$4 sm:$0xff]   ;;  %v1301_v3 = vld [vmem:[#allocation2 + $0xc] ss:$14 sps:$4 sm:$0x33]   ;;  %v1293_v9 = vld [vmem:[#allocation5 + $0x128] sm:$0xff]   ;;  %v166_v11 = vrot.slane %v1304_v6, %v1561_v36 }
  0x5e   :  { %1106 = vmatpush3.bf16.msra.mxu0 %v1261_v17  ;;  %v180_v56 = vpack.c.bf16 %v134_v53, %v134_v53  ;;  %v179_v57 = vpack.c.bf16 %v133_v54, %v133_v54  ;;  %v145_v7 = vrot.slane %v1299_v2, %v1561_v36  ;;  %v152_v8 = vrot.slane %v1301_v3, %v1561_v36  ;;  %v1294_v12 = vld [vmem:[#allocation5 + $0x170] sm:$0xff]   ;;  %v1296_v18 = vld [vmem:[#allocation5 + $0x178] sm:$0xff]   ;;  %v1308_v25 = vld [vmem:[#allocation7 + $0x18] sm:$0xff]  }
  0x5f   :  { %1107 = vmatprep.subr.bf16.mxu0 %v1264_v20  ;;  %619 = vmatprep.mubr.bf16.mxu0 %v178_v50  ;;  %v1295_v15 = vld [vmem:[#allocation5 + $0x130] sm:$0xff]   ;;  %v1297_v20 = vld [vmem:[#allocation5 + $0x138] sm:$0xff]   ;;  %v1313_v30 = vld [vmem:[#allocation8] sm:$0xff]  }
  0x60   :  { %1128 = vmatpush3.bf16.msra.mxu1 %v1263_v19  ;;  %659 = vmatprep.mubr.bf16.mxu1 %v180_v56  ;;  %v168_v13 = vcombine.high %v145_v7, %v159_v10  ;;  %v169_v14 = vcombine.low %v152_v8, %v166_v11  ;;  %v167_v19 = vcombine.low %v145_v7, %v159_v10  ;;  %v1306_v23 = vld [vmem:[#allocation7 + $0x8] sm:$0xff]   ;;  %v1307_v24 = vld [vmem:[#allocation7 + $0x10] sm:$0xff]   ;;  %v1026_v38 = vld [vmem:[%s1619_s2] ss:$0 sm:$0xff]  ;;  %v1450_v10 = vmov 1966171168  }
  0x61   :  { %1129 = vmatprep.subr.bf16.mxu1 %v1266_v22  ;;  %v1305_v22 = vld [vmem:[#allocation7] sm:$0xff]   ;;  %v1318_v36 = vld [vmem:[#allocation8 + $0x28] sm:$0xff]   ;;  %v976_v11 = vunpack.c.l.s4 %v1450_v10 }
  0x62   :  { %1108 = vmatpush3.bf16.msra.mxu0 %v1265_v21  ;;  %v182_v16 = vpack.c.bf16 %v168_v13, %v168_v13  ;;  %v183_v17 = vpack.c.bf16 %v169_v14, %v169_v14  ;;  %v181_v21 = vpack.c.bf16 %v167_v19, %v167_v19  ;;  %v1077_v2 = vld [vmem:[%s1621_s4] ss:$0 sm:$0xff] }
  0x63   :  { %1109 = vmatprep.subr.bf16.mxu0 %v1268_v27  ;;  %v1310_v27 = vld [vmem:[#allocation7 + $0x28] sm:$0xff]  }
  0x64   :  { %1130 = vmatpush3.bf16.msra.mxu1 %v1267_v26  ;;  %v1309_v26 = vld [vmem:[#allocation7 + $0x20] sm:$0xff]  }
  0x65   :  { %1131 = vmatprep.subr.bf16.mxu1 %v1270_v29  ;;  %v1312_v29 = vld [vmem:[#allocation7 + $0x38] sm:$0xff]  }
  0x66   :  { %1110 = vmatpush3.bf16.msra.mxu0 %v1269_v28  ;;  %v1311_v28 = vld [vmem:[#allocation7 + $0x30] sm:$0xff]  }
  0x67   :  { %1111 = vmatprep.subr.bf16.mxu0 %v1272_v33  ;;  %v1315_v33 = vld [vmem:[#allocation8 + $0x10] sm:$0xff]  }
  0x68   :  { %1132 = vmatpush3.bf16.msra.mxu1 %v1271_v32  ;;  %v1314_v32 = vld [vmem:[#allocation8 + $0x8] sm:$0xff]  }
  0x69   :  { %1133 = vmatprep.subr.bf16.mxu1 %v1274_v35  ;;  %v1317_v35 = vld [vmem:[#allocation8 + $0x20] sm:$0xff]  }
  0x6a   :  { %1112 = vmatpush3.bf16.msra.mxu0 %v1273_v34  ;;  %v1316_v34 = vld [vmem:[#allocation8 + $0x18] sm:$0xff]  }
  0x6b   :  { %1141 = vmatprep.subr.bf16.mxu0 %v1280_v42 }
  0x6c   :  { %1134 = vmatpush3.bf16.msra.mxu1 %v1279_v39 }
  0x6d   :  { %1183 = vmatprep.subr.bf16.mxu1 %v1448_v47  ;;  %620 = vmatmul.mubr.bf16.vlgmr.msra.gmra.mrb[0].mxu0 %v177_v51 }
  0x6e   :  { %1142 = vmatpush3.bf16.msra.mxu0 %v1283_v52  ;;  %699 = vmatprep.mubr.bf16.mxu0 %v182_v16 }
  0x6f   :  { %1143 = vmatprep.subr.bf16.mxu0 %v1284_v55  ;;  %660 = vmatmul.mubr.bf16.vlgmr.msra.gmra.mrb[0].mxu1 %v179_v57 }
  0x70   :  { %1185 = vmatprep.mubr.msk.bf16.mxu1 %vm1449_vm0, %v1448_v47  ;;  %1184 = vmatpush3.bf16.msra.mxu1 %v1298_v0  ;;  %v1319_v0 = vld [vmem:[#allocation8 + $0x30] sm:$0xff]  }
  0x71   :  { %1189 = vmatprep.subr.bf16.mxu1 %v1448_v47 }
  0x72   :  { %1144 = vmatpush3.bf16.msra.mxu0 %v1285_v58 }
  0x73   :  { %1145 = vmatprep.subr.bf16.mxu0 %v1286_v59 }
  0x76   :  { %1146 = vmatpush3.bf16.msra.mxu0 %v1287_v60 }
  0x77   :  { %1147 = vmatprep.subr.bf16.mxu0 %v1288_v61  ;;  %1186 = vmatmul.mubr.msk.bf16.vlgmr.msra.gmra.mrb[4].mxu1 %vm583_vm1, %v183_v17 }
  0x78   :  { %1205 = vmatprep.mubr.msk.bf16.mxu1 %vm1449_vm0, %v1448_v47  ;;  %1190 = vmatpush3.bf16.msra.mxu1 %v1305_v22 }
  0x79   :  { %1191 = vmatprep.subr.bf16.mxu1 %v1448_v47 }
  0x7a   :  { %1148 = vmatpush3.bf16.msra.mxu0 %v1289_v62 }
  0x7b   :  { %1149 = vmatprep.subr.bf16.mxu0 %v1290_v63 }
  0x7c   :  { %1192 = vmatpush3.bf16.msra.mxu1 %v1306_v23 }
  0x7d   :  { %1193 = vmatprep.subr.bf16.mxu1 %v1448_v47 }
  0x7e   :  { %1150 = vmatpush3.bf16.msra.mxu0 %v1291_v1  ;;  %v1320_v1 = vld [vmem:[#allocation8 + $0x38] sm:$0xff]  }
  0x7f   :  { %1151 = vmatprep.subr.bf16.mxu0 %v1292_v4 }
  0x80   :  { %1194 = vmatpush3.bf16.msra.mxu1 %v1307_v24 }
  0x81   :  { %1195 = vmatprep.subr.bf16.mxu1 %v1448_v47 }
  0x82   :  { %1152 = vmatpush3.bf16.msra.mxu0 %v1293_v9 }
  0x83   :  { %1153 = vmatprep.subr.bf16.mxu0 %v1294_v12  ;;  %v977_v12 = vunpack.c.0.s8 %v976_v11 }
  0x84   :  { %1196 = vmatpush3.bf16.msra.mxu1 %v1308_v25 }
  0x85   :  { %1197 = vmatprep.subr.bf16.mxu1 %v1448_v47 }
  0x86   :  { %1154 = vmatpush3.bf16.msra.mxu0 %v1295_v15  ;;  %v980_v15 = vsub.s32 %v977_v12, %v1558_v31 }
  0x87   :  { %1155 = vmatprep.subr.bf16.mxu0 %v1296_v18 }
  0x88   :  { %1198 = vmatpush3.bf16.msra.mxu1 %v1309_v26 }
  0x89   :  { %1199 = vmatprep.subr.bf16.mxu1 %v1448_v47 }
  0x8a   :  { %1156 = vmatpush3.bf16.msra.mxu0 %v1297_v20 }
  0x8b   :  { %1209 = vmatprep.subr.bf16.mxu0 %v1448_v47 }
  0x8c   :  { %1200 = vmatpush3.bf16.msra.mxu1 %v1310_v27 }
  0x8d   :  { %700 = vmatmul.mubr.bf16.vlgmr.msra.gmra.mrb[4].mxu0 %v181_v21  ;;  %1201 = vmatprep.subr.bf16.mxu1 %v1448_v47 }
  0x8e   :  { %1225 = vmatprep.mubr.msk.bf16.mxu0 %vm1449_vm0, %v1448_v47  ;;  %1210 = vmatpush3.bf16.msra.mxu0 %v1313_v30 }
  0x8f   :  { %1211 = vmatprep.subr.bf16.mxu0 %v1448_v47 }
  0x90   :  { %1202 = vmatpush3.bf16.msra.mxu1 %v1311_v28 }
  0x91   :  { %1203 = vmatprep.subr.bf16.mxu1 %v1448_v47 }
  0x92   :  { %1212 = vmatpush3.bf16.msra.mxu0 %v1314_v32 }
  0x93   :  { %1213 = vmatprep.subr.bf16.mxu0 %v1448_v47 }
  0x94   :  { %1204 = vmatpush3.bf16.msra.mxu1 %v1312_v29 }
  0x96   :  { %1214 = vmatpush3.bf16.msra.mxu0 %v1315_v33 }
  0x97   :  { %1215 = vmatprep.subr.bf16.mxu0 %v1448_v47 }
  0x9a   :  { %1216 = vmatpush3.bf16.msra.mxu0 %v1316_v34 }
  0x9b   :  { %1217 = vmatprep.subr.bf16.mxu0 %v1448_v47 }
  0x9e   :  { %1218 = vmatpush3.bf16.msra.mxu0 %v1317_v35 }
  0x9f   :  { %1219 = vmatprep.subr.bf16.mxu0 %v1448_v47 }
  0xa2   :  { %1220 = vmatpush3.bf16.msra.mxu0 %v1318_v36 }
  0xa3   :  { %1221 = vmatprep.subr.bf16.mxu0 %v1448_v47 }
  0xa6   :  { %1222 = vmatpush3.bf16.msra.mxu0 %v1319_v0 }
  0xa7   :  { %1223 = vmatprep.subr.bf16.mxu0 %v1448_v47  ;;  %v1086_v47 = vld [vmem:[%s1623_s6] ss:$0 sm:$0xff] }
  0xaa   :  { %1224 = vmatpush3.bf16.msra.mxu0 %v1320_v1 }
 0x140   :  { %v1113_v37 = vpop.f32.mrb[0].mxu0 }
 0x141   :  { %v1114_v39 = vpop.f32.mrb[1].mxu0 }
 0x142   :  { %v1115_v40 = vadd.f32 %v1114_v39, %v1113_v37  ;;  %v1116_v41 = vpop.f32.mrb[2].mxu0  ;;  %v1135_v42 = vpop.f32.mrb[0].mxu1 }
 0x143   :  { %v1117_v43 = vpop.f32.mrb[3].mxu0  ;;  %v1136_v45 = vpop.f32.mrb[1].mxu1 }
 0x144   :  { %v622_v44 = vadd.f32 %v1115_v40, %v1026_v38  ;;  %v1137_v46 = vadd.f32 %v1136_v45, %v1135_v42  ;;  %v1138_v48 = vpop.f32.mrb[2].mxu1 }
 0x145   :  { %v1139_v49 = vpop.f32.mrb[3].mxu1 }
 0x146   :  { %v662_v50 = vadd.f32 %v1137_v46, %v622_v44 }
 0x14a   :  { %v741_v51 = vpop.f32.mrb[4].mxu1 }
 0x14b   :  { %v1187_v52 = vpop.f32.mrb[5].mxu1 }
 0x14c   :  { %v744_v53 = vpop.f32.mrb[6].mxu1 }
 0x14d   :  { %v1188_v54 = vpop.f32.mrb[7].mxu1 }
 0x160   :  { %v1157_v55 = vpop.f32.mrb[4].mxu0 }
 0x161   :  { %v1158_v56 = vpop.f32.mrb[5].mxu0 }
 0x162   :  { %v1159_v57 = vadd.f32 %v1158_v56, %v1157_v55  ;;  %v1160_v58 = vpop.f32.mrb[6].mxu0 }
 0x163   :  { %v1161_v59 = vpop.f32.mrb[7].mxu0 }
 0x164   :  { %v702_v60 = vadd.f32 %v1159_v57, %v662_v50 }
 0x166   :  { %v742_v61 = vadd.f32 %v741_v51, %v702_v60 }
 0x168   :  { %v747_v62 = vmax.f32 %v742_v61, 0.0 }
 0x16a   :  { %v748_v63 = vpack.c.bf16 %v747_v62, %v747_v62 }
 0x16c   :  { %1206 = vmatmul.mubr.bf16.vlgmr.msra.gmra.mrb[8].mxu1 %v748_v63 }
 0x23f   :  { %v854_v3 = vpop.f32.mrb[8].mxu1 }
 0x240   :  { %v855_v4 = vadd.f32 %v1077_v2, %v854_v3  ;;  %v1207_v5 = vpop.f32.mrb[9].mxu1 }
 0x241   :  { %v857_v6 = vpop.f32.mrb[10].mxu1 }
 0x242   :  { %v860_v7 = vmax.f32 %v855_v4, 0.0  ;;  %v1208_v8 = vpop.f32.mrb[11].mxu1 }
 0x244   :  { %v861_v9 = vpack.c.bf16 %v860_v7, %v860_v7 }
 0x246   :  { %1226 = vmatmul.mubr.bf16.vlgmr.msra.gmra.mrb[8].mxu0 %v861_v9 }
 0x319   :  { %v967_v13 = vpop.f32.mrb[8].mxu0 }
 0x31a   :  { %v968_v14 = vadd.f32 %v1086_v47, %v967_v13  ;;  %v1227_v16 = vpop.f32.mrb[9].mxu0 }
 0x31b   :  { %v970_v17 = vpop.f32.mrb[10].mxu0 }
 0x31c   :  { %v973_v18 = vpack.c.bf16 %v968_v14, %v968_v14  ;;  %v1228_v19 = vpop.f32.mrb[11].mxu0 }
 0x31e   :  { %v981_v20 = vrot.slane %v973_v18, %v980_v15 }
 0x320   :  { %v982_v21 = vcombine.high %v981_v20, %v981_v20  ;;  %v989_v22 = vrot.slane %v981_v20, %v980_v15  ;;  %1095 = vst.sshfl [vmem:[#allocation10] sm:$0x1 pattern:$0x73625140] %v981_v20 }
 0x322   :  { %v996_v23 = vrot.slane %v982_v21, %v980_v15  ;;  %v997_v24 = vcombine.high %v989_v22, %v989_v22  ;;  %1096 = vst.sshfl [vmem:[#allocation10 + $0x1] sm:$0x1 pattern:$0x73625140] %v982_v21 }
 0x324   :  { %v998_v25 = vcombine.high %v996_v23, %v996_v23  ;;  %1005 = vst [vmem:[#allocation10 + $0x2] sm:$0x1] %v997_v24 }
 0x326   :  { %1006 = vst [vmem:[#allocation10 + $0x3] sm:$0x1] %v998_v25 }
 0x327   :  { %1011 = vsyncadd [#allocation4], 48  ;;  %s1451_s4 = smov [#allocation10]  }
 0x328   :  { %s1012_s6 = sshll.u32 %s1451_s4, 4  ;;  %s1013_s6 = int_to_ptr.vmem [resolvable:$true] %s1012_s6 }
 0x329   :  { %s1409_s8 = scalar_lea.vmem %s1013_s6, 16  ;;  %s1413_s9 = scalar_lea.vmem %s1013_s6, 64 }
 0x32a   :  { %p1410_p4 = scmp.ne.s32.totalorder %s1013_s6, %s1409_s8  ;;  %p1414_p5 = scmp.lt.s32.totalorder %s1013_s6, %s1013_s6 }
 0x32b   :  { %p1415_p6 = scmp.lt.s32.totalorder %s1413_s9, %s1409_s8 }
 0x32d   :  { %p1416_p7 = por %p1415_p6, %p1414_p5 }
 0x32f   :  { %p1417_p8 = pnand %p1416_p7, %p1410_p4 }
 0x331   :  { %1420 = shalt.err (!%p1417_p8)
}
 0x332   :  { %s1421_s14 = scalar_lea.hbm %s1624_s7, 16 }
 0x333   :  { %p1422_p9 = scmp.ne.s32.totalorder %s1624_s7, %s1421_s14  ;;  %p1425_p10 = scmp.lt.u32.totalorder %s1421_s14, %s1624_s7 }
 0x335   :  { %p1427_p11 = pnand %p1425_p10, %p1422_p9 }
 0x337   :  { %1430 = shalt.err (!%p1427_p11)
}
 0x338   :  { %s1452_s0 = smov 16   ;;  %s1453_s16 = smov 1  }
 0x339   :  { %1018 = dma.vmem_to_hbm [thread:$0]  %s1013_s6, 16, %s1624_s7, [#allocation4], %s1452_s0, %s1452_s0, %s1453_s16  }
 0x33a   :  { %1437 = dma.done.wait [#allocation4], 64  }
 0x33b   :  { %1438 = vsyncadd [#allocation4], 4294967232 }
 0x33c   :  { %1022 = vsyncpa [#allocation3], 1 }
 0x33d   :  { %1023 = vsyncpa [#allocation6], 1 }
 0x33e   :  { %1024 = vsyncpa [#allocation9], 1 }
 0x33f   :  { %1025 = vsyncpa [#allocation4], 1 }

</bundles_post_ra>
